<compile_context>
chip_gen: v7x
topology: tpu7x:2x2x1
jax: 0.10.0
libtpu: 0.0.40
codegen_flags: <defaults>
</compile_context>

<pallas_src>
import math

import jax
import jax.numpy as jnp
from jax.experimental import pallas as pl
from jax.experimental.pallas import tpu as pltpu


def _img_attention_kernel(x_ref, x2_ref, w1t_ref, b1_ref, o_ref):
    # x_ref  : (Bb, L, F)   raw region features
    # x2_ref : (Bb, 1, E)   precomputed tanh(hidden @ W2^T + b2)
    # w1t_ref: (F, E)       W1^T  (grid-resident, constant index_map)
    # b1_ref : (1, E)
    # o_ref  : (Bb, 1, F)
    bb, L, F = x_ref.shape
    E = w1t_ref.shape[1]

    x = x_ref[...]                                           # [Bb, L, F]

    # linear_1 + tanh as one big MXU matmul over all Bb*L region rows.
    # TODO(synk): nn.Dropout(0.5) training-mode random masking not implemented;
    # this reproduces eval-mode (identity) behavior.
    x_flat = x.reshape(bb * L, F)
    x1 = jnp.tanh(
        jnp.dot(x_flat, w1t_ref[...], preferred_element_type=jnp.float32)
        + b1_ref[...]
    ).reshape(bb, L, E)                                      # [Bb, L, E]

    # Attention logits on the MXU, lane-dense over the region axis L.
    x2 = x2_ref[...]                                         # [Bb, 1, E]
    s = jnp.einsum("bqe,ble->bql", x2, x1,
                   preferred_element_type=jnp.float32)       # [Bb, 1, L]

    # softmax over regions (lane axis), strictly per batch element.
    m = jnp.max(s, axis=-1, keepdims=True)
    p = jnp.exp(s - m)
    attn = p / jnp.sum(p, axis=-1, keepdims=True)            # [Bb, 1, L]

    # Weighted sum of the raw features: [Bb,1,L] @ [Bb,L,F] on the MXU.
    out = jnp.einsum("bql,blf->bqf", attn, x,
                     preferred_element_type=jnp.float32)     # [Bb, 1, F]
    o_ref[...] = out.astype(o_ref.dtype)


def _choose_block_batch(B, L, target_rows=256):
    """Batch elements per grid step: fill ~target_rows MXU rows, keep >=2 steps."""
    bb = max(1, min(B, -(-target_rows // L), max(1, (B + 1) // 2)))
    while B % bb:
        bb -= 1
    return bb


def img_attention_forward(x_nchw, hidden_h, W1, b1, W2, b2):
    """x_nchw: [B, C, H, W] float32, hidden_h (== hidden[0]): [1, B, hidden_dim]."""
    B, C, H, W = x_nchw.shape
    L, F = H * W, C
    E = W1.shape[0]
    assert E == F, "module semantics require embedding_dim == feature_dim"

    # reshape_feature: NCHW -> [B, L, F] (kept inside the jitted forward so the
    # transpose can fuse with the producer instead of a standalone HBM pass).
    x = jnp.transpose(x_nchw, (0, 2, 3, 1)).reshape(B, L, F)

    # Hoisted hidden-state projection: one [B, Hd] @ [Hd, E] matmul for all
    # batch elements (dropout = identity in eval mode).
    x2 = jnp.tanh(hidden_h[0] @ W2.T + b2)[:, None, :]       # [B, 1, E]

    w1t = W1.T                                               # [F, E]
    b1r = b1.reshape(1, E)

    Bb = _choose_block_batch(B, L)
    grid = (B // Bb,)

    out = pl.pallas_call(
        _img_attention_kernel,
        out_shape=jax.ShapeDtypeStruct((B, 1, F), jnp.float32),
        grid=grid,
        in_specs=[
            pl.BlockSpec((Bb, L, F), lambda i: (i, 0, 0)),   # x, Bb batches/step
            pl.BlockSpec((Bb, 1, E), lambda i: (i, 0, 0)),   # precomputed x2
            pl.BlockSpec((F, E), lambda i: (0, 0)),          # W1^T (resident)
            pl.BlockSpec((1, E), lambda i: (0, 0)),          # b1  (resident)
        ],
        out_specs=pl.BlockSpec((Bb, 1, F), lambda i: (i, 0, 0)),
        compiler_params=pltpu.CompilerParams(
            dimension_semantics=("parallel",)
        ),
    )(x, x2, w1t, b1r)
    return out.reshape(B, F)


def reference_forward(x_nchw, hidden_h, W1, b1, W2, b2):
    """Pure-JAX mirror of the PyTorch forward for validation."""
    B, C, H, W = x_nchw.shape
    x = jnp.transpose(x_nchw, (0, 2, 3, 1)).reshape(B, H * W, C)
    x1 = jnp.tanh(x @ W1.T + b1)                       # [B, L, E]
    h = jnp.transpose(hidden_h, (1, 0, 2))             # [B, 1, Hd]
    x2 = jnp.tanh(h @ W2.T + b2)                       # [B, 1, E]
    x4 = jnp.sum(x1 * x2, axis=2)                      # [B, L]
    x5 = jax.nn.softmax(x4, axis=1)                    # softmax over regions
    return jnp.sum(x * x5[..., None], axis=1)          # [B, F]


def init_params(key, hidden_dim, feature_dim, embedding_dim):
    """Deterministic PyTorch-style uniform(-1/sqrt(fan_in), 1/sqrt(fan_in)) init."""
    k1, k2, k3, k4 = jax.random.split(key, 4)
    bnd1 = 1.0 / math.sqrt(feature_dim)
    W1 = jax.random.uniform(k1, (embedding_dim, feature_dim), jnp.float32, -bnd1, bnd1)
    b1 = jax.random.uniform(k2, (embedding_dim,), jnp.float32, -bnd1, bnd1)
    bnd2 = 1.0 / math.sqrt(hidden_dim)
    W2 = jax.random.uniform(k3, (embedding_dim, hidden_dim), jnp.float32, -bnd2, bnd2)
    b2 = jax.random.uniform(k4, (embedding_dim,), jnp.float32, -bnd2, bnd2)
    # linear_3 is defined in __init__ but unused by forward(); omitted.
    return W1, b1, W2, b2


if __name__ == "__main__":
    # small shapes consistent with the module
    B, C, H, W = 2, 32, 4, 4          # feature_dim = C = 32, L = 16 regions
    hidden_dim = 16
    feature_dim = C
    embedding_dim = feature_dim       # required by the module's expand/mul

    key = jax.random.PRNGKey(0)
    kx, kh, kp = jax.random.split(key, 3)
    x_nchw = jax.random.normal(kx, (B, C, H, W), jnp.float32)
    hidden_h = jax.random.normal(kh, (1, B, hidden_dim), jnp.float32)  # hidden[0]
    W1, b1, W2, b2 = init_params(kp, hidden_dim, feature_dim, embedding_dim)

    fwd = jax.jit(img_attention_forward)
    out = jax.block_until_ready(fwd(x_nchw, hidden_h, W1, b1, W2, b2))

    ref = reference_forward(x_nchw, hidden_h, W1, b1, W2, b2)
    assert out.shape == (B, feature_dim)
    # tolerance accounts for MXU f32 accumulation-order differences vs pure XLA
    assert jnp.allclose(out, ref, atol=1e-3, rtol=1e-3), "mismatch vs pure-JAX reference"

    print("KERNEL_OK")
</pallas_src>

<mosaic_0001>
module attributes {stable_mosaic.version = 11 : i64} {
  func.func @_img_attention_kernel(%arg0: i32, %arg1: memref<1x16x32xf32, #tpu.memory_space<vmem>>, %arg2: memref<1x1x32xf32, #tpu.memory_space<vmem>>, %arg3: memref<32x32xf32, #tpu.memory_space<vmem>>, %arg4: memref<1x32xf32, #tpu.memory_space<vmem>>, %arg5: memref<1x1x32xf32, #tpu.memory_space<vmem>>) attributes {dimension_semantics = [#tpu.dimension_semantics<parallel>], iteration_bounds = array<i64: 2>, scalar_prefetch = 0 : i64, scratch_operands = 0 : i64, tpu.core_type = #tpu.core_type<tc>, window_params = [{transform_indices = @transform_0, window_bounds = array<i64: 1, 16, 32>}, {transform_indices = @transform_1, window_bounds = array<i64: 1, 1, 32>}, {pipeline_mode = #tpu.pipeline_mode<synchronous>, transform_indices = @transform_2, window_bounds = array<i64: 32, 32>}, {pipeline_mode = #tpu.pipeline_mode<synchronous>, transform_indices = @transform_3, window_bounds = array<i64: 1, 32>}, {transform_indices = @transform_4, window_bounds = array<i64: 1, 1, 32>}]} {
    %c0 = arith.constant 0 : index
    %c0_0 = arith.constant 0 : index
    %c0_1 = arith.constant 0 : index
    %0 = vector.load %arg1[%c0, %c0_0, %c0_1] : memref<1x16x32xf32, #tpu.memory_space<vmem>>, vector<1x16x32xf32>
    %1 = vector.shape_cast %0 : vector<1x16x32xf32> to vector<16x32xf32>
    %c0_2 = arith.constant 0 : index
    %c0_3 = arith.constant 0 : index
    %2 = vector.load %arg3[%c0_2, %c0_3] : memref<32x32xf32, #tpu.memory_space<vmem>>, vector<32x32xf32>
    %cst = arith.constant dense<0.000000e+00> : vector<16x32xf32>
    %3 = tpu.matmul %1, %2, %cst {dimension_numbers = #tpu.dot_dimension_numbers<[1], [0], [0], [1], [0, 0, 1, 1], [], []>} : vector<16x32xf32>, vector<32x32xf32>, vector<16x32xf32> -> vector<16x32xf32>
    %c0_4 = arith.constant 0 : index
    %c0_5 = arith.constant 0 : index
    %4 = vector.load %arg4[%c0_4, %c0_5] : memref<1x32xf32, #tpu.memory_space<vmem>>, vector<1x32xf32>
    %5 = vector.broadcast %4 : vector<1x32xf32> to vector<16x32xf32>
    %6 = arith.addf %3, %5 : vector<16x32xf32>
    %7 = math.tanh %6 : vector<16x32xf32>
    %8 = vector.shape_cast %7 : vector<16x32xf32> to vector<1x16x32xf32>
    %c0_6 = arith.constant 0 : index
    %c0_7 = arith.constant 0 : index
    %c0_8 = arith.constant 0 : index
    %9 = vector.load %arg2[%c0_6, %c0_7, %c0_8] : memref<1x1x32xf32, #tpu.memory_space<vmem>>, vector<1x1x32xf32>
    "tpu.trace_start"() <{level = 10 : i32, message = "bqe,ble->bql"}> : () -> ()
    %cst_9 = arith.constant dense<0.000000e+00> : vector<1x1x16xf32>
    %10 = tpu.matmul %9, %8, %cst_9 {dimension_numbers = #tpu.dot_dimension_numbers<[2], [2], [1], [1], [0, 0, 0, 1, 1, 1], [0], [0]>} : vector<1x1x32xf32>, vector<1x16x32xf32>, vector<1x1x16xf32> -> vector<1x1x16xf32>
    "tpu.trace_stop"() : () -> ()
    %cst_10 = arith.constant dense<0xFF800000> : vector<1x1xf32>
    %11 = vector.multi_reduction <maximumf>, %10, %cst_10 [2] : vector<1x1x16xf32> to vector<1x1xf32>
    %12 = vector.shape_cast %11 : vector<1x1xf32> to vector<1x1x1xf32>
    %13 = vector.broadcast %12 : vector<1x1x1xf32> to vector<1x1x16xf32>
    %14 = arith.subf %10, %13 : vector<1x1x16xf32>
    %15 = math.exp %14 : vector<1x1x16xf32>
    %cst_11 = arith.constant dense<0.000000e+00> : vector<1x1xf32>
    %16 = vector.multi_reduction <add>, %15, %cst_11 [2] : vector<1x1x16xf32> to vector<1x1xf32>
    %17 = vector.shape_cast %16 : vector<1x1xf32> to vector<1x1x1xf32>
    %18 = vector.broadcast %17 : vector<1x1x1xf32> to vector<1x1x16xf32>
    %19 = arith.divf %15, %18 : vector<1x1x16xf32>
    "tpu.trace_start"() <{level = 10 : i32, message = "bql,blf->bqf"}> : () -> ()
    %cst_12 = arith.constant dense<0.000000e+00> : vector<1x1x32xf32>
    %20 = tpu.matmul %19, %0, %cst_12 {dimension_numbers = #tpu.dot_dimension_numbers<[2], [1], [1], [2], [0, 0, 0, 1, 1, 2], [0], [0]>} : vector<1x1x16xf32>, vector<1x16x32xf32>, vector<1x1x32xf32> -> vector<1x1x32xf32>
    "tpu.trace_stop"() : () -> ()
    %c0_13 = arith.constant 0 : index
    %c0_14 = arith.constant 0 : index
    %c0_15 = arith.constant 0 : index
    %21 = vector.load %arg5[%c0_13, %c0_14, %c0_15] : memref<1x1x32xf32, #tpu.memory_space<vmem>>, vector<1x1x32xf32>
    tpu.vector_store %arg5[%c0_13, %c0_14, %c0_15], %20 {strides = array<i32>} : memref<1x1x32xf32, #tpu.memory_space<vmem>>, vector<1x1x32xf32>,
    return
  }
  func.func @transform_0(%arg0: i32) -> (i32, i32, i32) {
    %c0_i32 = arith.constant 0 : i32
    %c0_i32_0 = arith.constant 0 : i32
    %c0_i32_1 = arith.constant 0 : i32
    return %arg0, %c0_i32, %c0_i32_0 : i32, i32, i32
  }
  func.func @transform_1(%arg0: i32) -> (i32, i32, i32) {
    %c0_i32 = arith.constant 0 : i32
    %c0_i32_0 = arith.constant 0 : i32
    %c0_i32_1 = arith.constant 0 : i32
    return %arg0, %c0_i32, %c0_i32_0 : i32, i32, i32
  }
  func.func @transform_2(%arg0: i32) -> (i32, i32) {
    %c0_i32 = arith.constant 0 : i32
    %c0_i32_0 = arith.constant 0 : i32
    %c0_i32_1 = arith.constant 0 : i32
    return %c0_i32, %c0_i32_0 : i32, i32
  }
  func.func @transform_3(%arg0: i32) -> (i32, i32) {
    %c0_i32 = arith.constant 0 : i32
    %c0_i32_0 = arith.constant 0 : i32
    %c0_i32_1 = arith.constant 0 : i32
    return %c0_i32, %c0_i32_0 : i32, i32
  }
  func.func @transform_4(%arg0: i32) -> (i32, i32, i32) {
    %c0_i32 = arith.constant 0 : i32
    %c0_i32_0 = arith.constant 0 : i32
    %c0_i32_1 = arith.constant 0 : i32
    return %arg0, %c0_i32, %c0_i32_0 : i32, i32, i32
  }
}

</mosaic_0001>

<bundles_post_ra>
// kernel: img_attention_forward.1
= control target key start
LH: loop header
LB: loop body
LE: loop exit
PB: predicated region body
PF: predicated region fallthrough
CT: control target
= control target key end

     0   :  { %9 = vsyncpa [#allocation3], 0  ;;  %s890_s0 = inlined_call_operand.vmem [shape: f32[2,16,32], index: 0, kind: input, shape index: {}]   ;;  %s891_s1 = inlined_call_operand.vmem [shape: f32[2,1,32], index: 1, kind: input, shape index: {}]   ;;  %s892_s2 = inlined_call_operand.vmem [shape: f32[32,32], index: 2, kind: input, shape index: {}]   ;;  %s893_s3 = inlined_call_operand.vmem [shape: f32[1,32], index: 3, kind: input, shape index: {}]   ;;  %s894_s4 = inlined_call_operand.hbm [shape: f32[2,1,32], index: 4, kind: output, shape index: {}]  }
   0x1   :  { %11 = vsyncpa [#allocation3 + $0x1], 0  ;;  %s763_s15 = smov 0   ;;  %s765_s16 = smov 0  }
   0x2   :  { %s767_s17 = smov 0   ;;  %s769_s18 = smov 0  }
   0x3 LB: > { %s784_s19 = sadd.s32 4294967295, %s732_s18   ;;  %s551_s20 = sadd.s32 4294967294, %s732_s18   ;;  %s732_s18 = sphi %s769_s18, %s900_s18   ;;  %s728_s17 = sphi %s767_s17, %s899_s17   ;;  %s724_s16 = sphi %s765_s16, %s898_s16   ;;  %s720_s15 = sphi %s763_s15, %s897_s15  }
   0x4   : > { %s788_s21 = sadd.s32 1, %s732_s18   ;;  %s118_s22 = sadd.s32 1, %s728_s17 }
   0x5   : > { %s115_s23 = ssub.s32 %s732_s18, %s788_s21  ;;  %p128_p0 = scmp.ne.s32.totalorder %s728_s17, %s724_s16 }
   0x6   : > { %p116_p1 = scmp.eq.s32.totalorder %s115_s23, 0  ;;  %p129_p2 = scmp.eq.s32.totalorder %s784_s19, 1 }
   0x7   : > { %p134_p3 = scmp.ne.s32.totalorder %s724_s16, %s720_s15  ;;  %p135_p4 = scmp.eq.s32.totalorder %s551_s20, 1 }
   0x8   : > { %s799_s24 = scalar_select %p116_p1, %s728_s17, %s118_s22  }
   0x9   : > { %p801_p5 = por %p129_p2, %p128_p0  ;;  %p805_p6 = por %p135_p4, %p134_p3 }
   0xa   : > { %p554_p7 = scmp.ge.s32.totalorder %s732_s18, 1  ;;  %p173_p8 = scmp.lt.s32.totalorder %s732_s18, 3 }
   0xc   : > { %p174_p9 = pnand %p554_p7, %p173_p8 }
   0xd   : > { %v211_v0 = vld [vmem:[%s892_s2] sm:$0xff] (!%p174_p9)  ;;  %v212_v1 = vld [vmem:[%s892_s2 + $0x8] sm:$0xff] (!%p174_p9)  ;;  %v213_v2 = vld [vmem:[%s892_s2 + $0x10] sm:$0xff] (!%p174_p9)  ;;  %p201_p10 = scmp.lt.s32.totalorder (!%p174_p9), %s784_s19, 1  ;;  %vm222_vm0 = vcmask (!%p174_p9), 261120   ;;  %v734_v9 = vmov (!%p174_p9), 0.0|0.0  }
   0xe   : > { %177 = sbr.rel (%p174_p9) target bundleno = 1014 (0x3f6), region = 36  ;;  %v605_v3 = vpack.c.bf16 (!%p174_p9), %v212_v1, %v211_v0  ;;  %v214_v4 = vld [vmem:[%s892_s2 + $0x18] sm:$0xff] (!%p174_p9)  ;;  %613 = vmatprep.subr.bf16.mxu1 (!%p174_p9), %v734_v9  ;;  %vm735_vm1 = vmmov (!%p174_p9), 0   ;;  %v736_v10 = vmov (!%p174_p9), 0.0   ;;  %v557_v11 = vld [vmem:[%s893_s3] ss:$0 sm:$0xff] (!%p174_p9)  ;;  %vm615_vm2 = vmpackc.low (!%p174_p9), %vm222_vm0, %vm222_vm0 }
   0xf   : > { %v609_v5 = vpack.c.bf16 (!%p174_p9), %v214_v4, %v213_v2  ;;  %595 = vmatprep.mubr.msk.f32.mxu1 (!%p174_p9), %vm735_vm1, %v736_v10  ;;  %vm386_vm3 = vcmask (!%p174_p9), 122880   ;;  %vm398_vm4 = vcmask (!%p174_p9), 130048   ;;  %s199_s28 = sand.u32 (!%p174_p9), 1, %s724_s16   ;;  %s564_s29 = sshll.u32 (!%p174_p9), %s784_s19, 4  ;;  %vm472_vm5 = vcmask (!%p174_p9), 253952  }
  0x10   : > { %606 = vmatprep.subr.bf16.mxu0 (!%p174_p9), %v605_v3  ;;  %s200_s30 = scalar_lea.vmem (!%p174_p9), [#allocation2], %s199_s28  ;;  %s848_s8 = scalar_lea.hbm (!%p174_p9), %s894_s4, %s564_s29 }
  0x11   : > { %608 = vmatpush3.bf16.msra.mxu0 (!%p174_p9), %v605_v3  ;;  %s487_s5 = sshll.u32 (!%p174_p9), %s200_s30, 4  ;;  %s850_s5 = int_to_ptr.vmem [resolvable:$true] %s487_s5 }
  0x12   : > { %610 = vmatprep.subr.bf16.mxu0 (!%p174_p9), %v609_v5 }
  0x15   : > { %s825_s9 = scalar_select %p201_p10, %s784_s19, 1  ;;  %612 = vmatpush3.bf16.msra.mxu0 %v609_v5 }
  0x16   : > { %617 = vmatprep.subr.bf16.mxu0 %v734_v9  ;;  %s737_s19 = smov [#allocation2]  }
  0x17   : > { %s567_s10 = sshll.u32 %s825_s9, 4  ;;  %s208_s27 = scalar_lea.vmem %s891_s1, %s825_s9 }
  0x18   : > { %s205_s13 = scalar_lea.vmem %s890_s0, %s567_s10  ;;  %v306_v19 = vld [vmem:[%s208_s27] sm:$0x1]  ;;  %s475_s9 = scalar_lea.sflag [#allocation3], %s199_s28 }
  0x19   : > { %v209_v6 = vld [vmem:[%s205_s13] sm:$0xff]  ;;  %v210_v7 = vld [vmem:[%s205_s13 + $0x8] sm:$0xff]  ;;  %s670_s10 = scalar_lea.vmem %s850_s5, 16  ;;  %s674_s11 = sshll.u32 %s737_s19, 4  ;;  %s675_s11 = int_to_ptr.vmem [resolvable:$false] %s674_s11 }
  0x1a   : > { %588 = vmatprep.mubr.msk.f32.mxu0 %vm222_vm0, %v209_v6  ;;  %v618_v8 = vpack.c.bf16 %v210_v7, %v209_v6  ;;  %p671_p11 = scmp.ne.s32.totalorder %s850_s5, %s670_s10  ;;  %s676_s12 = scalar_lea.vmem %s675_s11, 32 }
  0x1b   : > { %589 = vmatmul.mubr.msk.f32.vlgmr.msra.gmra.mrb[0].mxu0 %vm222_vm0, %v210_v7  ;;  %p677_p0 = scmp.lt.s32.totalorder %s850_s5, %s675_s11  ;;  %p678_p1 = scmp.lt.s32.totalorder %s676_s12, %s670_s10 }
  0x1c   : > { %619 = vmatpush3.bf16.msra.mxu0 %v618_v8  ;;  %602 = vmatprep.mubr.msk.f32.mxu0 %vm735_vm1, %v736_v10  ;;  %p672_p12 = pnand %p671_p11, %p801_p5 }
  0x1d   : > { %p679_p2 = por %p678_p1, %p677_p0 }
  0x1e   : > { %p673_p13 = pneg %p672_p12 }
  0x20   : > { %p680_p3 = pnand %p679_p2, %p673_p13 }
  0xee   : > { %v590_v12 = vpop.f32.mrb[0].mxu0 }
  0xef   : > { %v301_v13 = vadd.f32 %v590_v12, %v557_v11  ;;  %v295_v14 = vpop.f32.mrb[1].mxu0 }
  0xf0   : > { %v296_v15 = vadd.f32 %v557_v11, %v295_v14 }
  0xf1   : > { %662 = vtanh.f32 %v301_v13 }
  0xf2   : > { %664 = vtanh.f32 %v296_v15 }
  0xfb   : > { %v663_v16 = vpop.eup %662 }
  0xfc   : > { %v665_v17 = vpop.eup %664 }
  0xfd   : > { %v614_v18 = vpack.c.bf16 %v663_v16, %v665_v17 }
  0xff   : > { %616 = vmatpush3.bf16.xpose.msk.msra.mxu1 %vm615_vm2, %v614_v18 }
 0x106   : > { %596 = vmatmul.mubr.msk.f32.vlgmr.msra.gmra.mrb[0].mxu1 %vm222_vm0, %v306_v19 }
 0x1d9   : > { %v382_v20 = vpop.f32.mrb[0].mxu1 }
 0x1da   : > { %v597_v21 = vpop.f32.mrb[1].mxu1  ;;  %v387_v22 = vsel %vm386_vm3, %v382_v20, -inf }
 0x1db   : > { %388 = vmax.xlane.f32.xlu0 %v387_v22 }
 0x268   : > { %v389_v23 = vpop.xlane.xlu0 %388 }
 0x269   : > { %v390_v24 = vsub.f32 %v382_v20, %v389_v23 }
 0x26b   : > { %v391_v25 = vmul.f32 1.442695, %v390_v24 }
 0x26d   : > { %666 = vpow2.f32 %v391_v25 }
 0x277   : > { %v667_v26 = vpop.eup %666 }
 0x278   : > { %v393_v27 = vsel %vm386_vm3, %v667_v26, 0.0 }
 0x279   : > { %394 = vadd.xlane.f32.xlu0 %v393_v27 }
 0x306   : > { %v395_v28 = vpop.xlane.xlu0 %394 }
 0x307   : > { %668 = vrcp.f32 %v395_v28 }
 0x311   : > { %v669_v29 = vpop.eup %668 }
 0x312   : > { %v397_v30 = vmul.f32 %v669_v29, %v667_v26 }
 0x314   : > { %603 = vmatmul.mubr.msk.f32.vlgmr.msra.gmra.mrb[2].mxu0 %vm398_vm4, %v397_v30 }
 0x3e7   : > { %v468_v31 = vpop.f32.mrb[2].mxu0 }
 0x3e8   : > { %473 = vst.msk [vmem:[%s200_s30] sm:$0x1] %vm472_vm5, %v468_v31  ;;  %v604_v32 = vpop.f32.mrb[3].mxu0 }
 0x3e9   : > { %683 = shalt.err (!%p680_p3)
}
 0x3ea   : > { %s684_s13 = scalar_lea.hbm %s848_s8, 16  ;;  %s688_s22 = scalar_lea.hbm %s894_s4, 32 }
 0x3eb   : > { %p685_p4 = scmp.ne.s32.totalorder %s848_s8, %s684_s13  ;;  %p689_p9 = scmp.lt.u32.totalorder %s848_s8, %s894_s4 }
 0x3ec   : > { %p690_p10 = scmp.lt.u32.totalorder %s688_s22, %s684_s13  ;;  %p692_p12 = scmp.lt.u32.totalorder %s684_s13, %s848_s8 }
 0x3ed   : > { %p686_p7 = pnand %p685_p4, %p801_p5 }
 0x3ee   : > { %p691_p11 = por %p690_p10, %p689_p9 }
 0x3ef   : > { %p687_p8 = pneg %p686_p7 }
 0x3f0   : > { %p693_p13 = por %p692_p12, %p691_p11 }
 0x3f2   : > { %p694_p0 = pnand %p693_p13, %p687_p8 }
 0x3f4   : > { %697 = shalt.err (!%p694_p0)
}
 0x3f5   : > { %620 = dma.vmem_to_hbm [thread:$0]  (%p801_p5), %s850_s5, 16, %s848_s8, %s475_s9  }
 0x3f6 PF: > { %p626_p1 = scmp.ge.s32.totalorder %s732_s18, 2  ;;  %s499_s28 = sand.u32 1, %s720_s15  }
 0x3f7   : > { %s500_s29 = scalar_lea.sflag [#allocation3], %s499_s28 }
 0x3f8   : > { %p623_p2 = pnand %p626_p1, %p805_p6 }
 0x3fa   : > { %715 = dma.done.wait (!%p623_p2), %s500_s29, 16  }
 0x3fb   : > { %717 = vsyncadd (!%p623_p2), %s500_s29, 4294967280  ;;  %p14_p3 = scmp.ge.s32.totalorder %s788_s21, 4   ;;  %s897_s15 = smov %s724_s16 }
 0x3fc   : > { %s898_s16 = smov %s728_s17  ;;  %s899_s17 = smov %s799_s24 }
 0x3fd   : > { %s900_s18 = smov %s788_s21  ;;  %16 = sbr.rel (!%p14_p3) target bundleno = 3 (0x3), region = 74 }
 0x404   :  { %504 = vsyncpa [#allocation3], 1 }
 0x405   :  { %506 = vsyncpa [#allocation3 + $0x1], 1 }

</bundles_post_ra>
